<compile_context>
chip_gen: v5e
topology: v5e:2x2
jax: 0.10.0
libtpu: 0.0.40
codegen_flags: <defaults>
</compile_context>

<pallas_src>
import functools
import math

import jax
import jax.numpy as jnp
from jax.experimental import pallas as pl
from jax.experimental.pallas import tpu as pltpu


def _cosine_encoding_kernel(x_ref, rep_ref, w_ref, p_ref, o_ref, *,
                            use_mxu, row_chunk, min_value, scale):
    """x_ref: (T, g) f32; rep_ref: (g, L) 0/1 f32; w_ref/p_ref: (8, L) f32;
    o_ref: (T, L).  T is a multiple of row_chunk; row_chunk a multiple of 8."""
    lane_dim = w_ref.shape[-1]
    w = w_ref[...]                      # (8, L) full-vreg-height tables
    p = p_ref[...]
    n_chunks = o_ref.shape[0] // row_chunk

    def chunk_body(c, carry):
        r0 = pl.multiple_of(c * row_chunk, row_chunk)
        # Affine on the narrow (chunk, g) block: subtract min BEFORE scaling and
        # lane expansion (matches the reference association; avoids folding
        # scale*min*freq into the phase, which loses angle precision).
        xs = (x_ref[pl.ds(r0, row_chunk), :] - min_value) * scale
        if use_mxu:
            # Exact lane replication: 0/1 block-diagonal matmul on the idle MXU.
            # HIGHEST precision keeps f32 replication exact (single 0/1 term).
            xr = jnp.dot(xs, rep_ref[...],
                         precision=jax.lax.Precision.HIGHEST,
                         preferred_element_type=jnp.float32)
            xr = xr.reshape(row_chunk // 8, 8, lane_dim)
        else:
            xr = xs.reshape(row_chunk // 8, 8, 1)   # g == 1: lane-broadcast in the mul
        # One fused cos per chunk; the sin half of do_sin is a pi/2 phase shift.
        ang = xr * w - p
        o_ref[pl.ds(r0, row_chunk), :] = (
            jnp.cos(ang).reshape(row_chunk, lane_dim).astype(o_ref.dtype))
        return carry

    jax.lax.fori_loop(0, n_chunks, chunk_body, 0,
                      unroll=True if n_chunks <= 8 else False)


def make_freqs(outp_dim, scheme, do_sin):
    freq_dim = outp_dim // 2 if do_sin else outp_dim
    f = jnp.arange(freq_dim, dtype=jnp.float32)
    if scheme in ("exp", "exponential"):
        f = jnp.exp(f)
    elif scheme == "pow":
        f = 2.0 ** f
    elif scheme in ("lin", "linear"):
        f = f + 1.0
    else:
        raise ValueError(f"Unrecognised frequency scaling: {scheme}")
    return f


def _build_tables(outp_dim, scheme, do_sin, g):
    """Per-lane freq/phase tables (8, g*D) and the 0/1 lane-expansion matrix."""
    freq_dim = outp_dim // 2 if do_sin else outp_dim
    f = make_freqs(outp_dim, scheme, do_sin)                      # (F,)
    if do_sin:
        freqs_ext = jnp.concatenate([f, f])                       # (D,)
        phase = jnp.concatenate(
            [jnp.zeros((freq_dim,), jnp.float32),
             jnp.full((freq_dim,), math.pi / 2, jnp.float32)])    # sin = cos(t-pi/2)
    else:
        freqs_ext = f
        phase = jnp.zeros((outp_dim,), jnp.float32)
    lane_dim = g * outp_dim
    # Replicated to 8 sublanes host-side -> full-vreg operands in the kernel.
    w_tab = jnp.tile(jnp.tile(freqs_ext, g)[None, :], (8, 1))     # (8, g*D)
    p_tab = jnp.tile(jnp.tile(phase, g)[None, :], (8, 1))         # (8, g*D)
    rep = (jnp.eye(g, dtype=jnp.float32)[:, :, None]
           * jnp.ones((1, 1, outp_dim), jnp.float32)).reshape(g, lane_dim)
    return rep, w_tab, p_tab


def cosine_encoding(x, *, outp_dim, scheme="lin", min_value=0.0, max_value=1.0,
                    do_sin=False, out_dtype=jnp.float32):
    """Pallas implementation of CosineEncoding.forward.

    out_dtype=jnp.bfloat16 halves output HBM traffic (big win on write-bound
    v5e) if the consumer tolerates it; default float32 matches the module.
    """
    if do_sin:
        assert outp_dim % 2 == 0, "If using cos+sin, output dim must be even!"

    min_value = float(min_value)
    max_value = float(max_value)
    scale = math.pi / (max_value - min_value)

    # ---- lane fold factor g --------------------------------------------------
    g = math.lcm(outp_dim, 128) // outp_dim
    if g * outp_dim > 4096:
        # Rare fallback (huge lcm): abandon the 128-multiple-lane premise but keep
        # stores mostly dense. Correct; partially masked stores on this path only.
        g = max(1, 512 // outp_dim)
    # Widen so lane_dim >= 512: keeps the lane-padded input block small relative
    # to the output block and cuts per-row grid/DMA overhead.
    while g * outp_dim < 512 and 2 * g * outp_dim <= 4096:
        g *= 2
    lane_dim = g * outp_dim
    use_mxu = g > 1

    rep, w_tab, p_tab = _build_tables(outp_dim, scheme, do_sin, g)

    orig_shape = x.shape
    n = int(x.size)
    n_rows = pl.cdiv(n, g)
    n_rows_pad = pl.cdiv(n_rows, 8) * 8          # only pad rows to a multiple of 8

    # ---- tile sizing with an explicit VMEM budget ----------------------------
    in_lane = pl.cdiv(g, 128) * 128              # lane-padded input width in VMEM
    # In-kernel row sub-chunk for the dot+cos loop (~512 KiB intermediates).
    row_chunk = max(8, min(512, ((512 * 1024) // (lane_dim * 4)) // 8 * 8))
    row_chunk = min(row_chunk, n_rows_pad)       # never exceed the array

    vmem_budget = 20 * 1024 * 1024               # headroom under the 32 MiB limit
    bytes_fixed = 4 * (2 * g * lane_dim          # rep (double buffered)
                       + 2 * 2 * 8 * lane_dim    # w/p tables
                       + 4 * row_chunk * lane_dim)   # chunk intermediates
    bytes_per_row = 4 * (2 * lane_dim + 2 * in_lane)  # out + in, double buffered
    tile_n = max(row_chunk,
                 ((vmem_budget - bytes_fixed) // bytes_per_row)
                 // row_chunk * row_chunk)
    tile_n = min(tile_n, 8192)
    # v7x megacore: keep >= 2 (ideally >= 4) grid steps when the input allows it.
    if n_rows_pad >= 4 * row_chunk:
        min_steps = 4
    elif n_rows_pad >= 2 * row_chunk:
        min_steps = 2
    else:
        min_steps = 1
    if min_steps > 1:
        tile_n = min(tile_n, max(row_chunk,
                                 (n_rows_pad // min_steps) // row_chunk * row_chunk))
    # Block never larger than the array along rows (last grid block may be partial).
    tile_n = min(tile_n, max(row_chunk, (n_rows_pad // row_chunk) * row_chunk))

    num_steps = pl.cdiv(n_rows_pad, tile_n)

    # ---- input prep: zero copies in the common case --------------------------
    n_pad = n_rows_pad * g
    x_flat = x.reshape(-1).astype(jnp.float32)
    if n_pad != n:                               # only when n % g != 0 or rows % 8 != 0
        x_flat = jnp.pad(x_flat, (0, n_pad - n))
    x2 = x_flat.reshape(n_rows_pad, g)

    kernel = functools.partial(_cosine_encoding_kernel, use_mxu=use_mxu,
                               row_chunk=row_chunk, min_value=min_value,
                               scale=scale)

    cost = pl.CostEstimate(
        flops=int(2 * n * lane_dim + 2 * n * outp_dim + 2 * n),
        transcendentals=int(n * outp_dim),
        bytes_accessed=int(4 * n + jnp.dtype(out_dtype).itemsize * n * outp_dim),
    )

    out = pl.pallas_call(
        kernel,
        out_shape=jax.ShapeDtypeStruct((n_rows_pad, lane_dim), out_dtype),
        grid=(num_steps,),
        in_specs=[
            pl.BlockSpec((tile_n, g), lambda i: (i, 0)),      # x rows (tiled)
            pl.BlockSpec((g, lane_dim), lambda i: (0, 0)),    # 0/1 expand matrix
            pl.BlockSpec((8, lane_dim), lambda i: (0, 0)),    # freq table
            pl.BlockSpec((8, lane_dim), lambda i: (0, 0)),    # phase table
        ],
        out_specs=pl.BlockSpec((tile_n, lane_dim), lambda i: (i, 0)),
        compiler_params=pltpu.CompilerParams(
            dimension_semantics=("parallel",),
            vmem_limit_bytes=32 * 1024 * 1024),
        cost_estimate=cost,
    )(x2, rep, w_tab, p_tab)

    out = out.reshape(n_rows_pad * g, outp_dim)
    if n_pad != n:
        out = out[:n]
    return out.reshape(*orig_shape, outp_dim)


def _reference(x, *, outp_dim, scheme, min_value, max_value, do_sin):
    """Pure-JAX reference replicating the PyTorch forward."""
    freqs = make_freqs(outp_dim, scheme, do_sin)
    xs = (x.astype(jnp.float32) - min_value) * math.pi / (max_value - min_value)
    ang = xs[..., None] * freqs
    if do_sin:
        return jnp.concatenate([jnp.cos(ang), jnp.sin(ang)], axis=-1)
    return jnp.cos(ang)


if __name__ == "__main__":
    key = jax.random.PRNGKey(0)
    x = jax.random.uniform(key, (2, 8, 4), dtype=jnp.float32)

    # Tolerance: angle association now matches the reference (min subtracted
    # before scaling/expansion); residual diffs are a few ulp of cos/sin.
    tol = dict(atol=1e-3, rtol=1e-3)

    # Case 1: defaults (lin, cos only), outp_dim=32 -> g widened to 16, lane 512.
    out1 = cosine_encoding(x, outp_dim=32, scheme="lin",
                           min_value=0.0, max_value=1.0, do_sin=False)
    jax.block_until_ready(out1)
    ref1 = _reference(x, outp_dim=32, scheme="lin",
                      min_value=0.0, max_value=1.0, do_sin=False)
    assert out1.shape == (2, 8, 4, 32)
    assert jnp.allclose(out1, ref1, **tol)

    # Case 2: cos+sin, 'pow' scheme, outp_dim=12 -> g widened to 64, lane 768.
    out2 = cosine_encoding(x, outp_dim=12, scheme="pow",
                           min_value=0.0, max_value=1.0, do_sin=True)
    jax.block_until_ready(out2)
    ref2 = _reference(x, outp_dim=12, scheme="pow",
                      min_value=0.0, max_value=1.0, do_sin=True)
    assert out2.shape == (2, 8, 4, 12)
    assert jnp.allclose(out2, ref2, **tol)

    # Case 3: cos+sin, lin, outp_dim=128 (g widened 1->4), odd-sized input
    # exercising the (small) pad/slice path and a shifted [min, max] range.
    x3 = jax.random.uniform(jax.random.PRNGKey(0), (3, 5, 7), dtype=jnp.float32,
                            minval=-2.0, maxval=3.0)
    out3 = cosine_encoding(x3, outp_dim=128, scheme="lin",
                           min_value=-2.0, max_value=3.0, do_sin=True)
    jax.block_until_ready(out3)
    ref3 = _reference(x3, outp_dim=128, scheme="lin",
                      min_value=-2.0, max_value=3.0, do_sin=True)
    assert out3.shape == (3, 5, 7, 128)
    assert jnp.allclose(out3, ref3, **tol)

    print("KERNEL_OK")
</pallas_src>

<mosaic_0001>
module attributes {stable_mosaic.version = 11 : i64} {
  func.func @_cosine_encoding_kernel(%arg0: i32, %arg1: memref<8x16xf32, #tpu.memory_space<vmem>>, %arg2: memref<16x512xf32, #tpu.memory_space<vmem>>, %arg3: memref<8x512xf32, #tpu.memory_space<vmem>>, %arg4: memref<8x512xf32, #tpu.memory_space<vmem>>, %arg5: memref<8x512xf32, #tpu.memory_space<vmem>>) attributes {dimension_semantics = [#tpu.dimension_semantics<parallel>], iteration_bounds = array<i64: 1>, scalar_prefetch = 0 : i64, scratch_operands = 0 : i64, tpu.core_type = #tpu.core_type<tc>, window_params = [{transform_indices = @transform_0, window_bounds = array<i64: 8, 16>}, {pipeline_mode = #tpu.pipeline_mode<synchronous>, transform_indices = @transform_1, window_bounds = array<i64: 16, 512>}, {pipeline_mode = #tpu.pipeline_mode<synchronous>, transform_indices = @transform_2, window_bounds = array<i64: 8, 512>}, {pipeline_mode = #tpu.pipeline_mode<synchronous>, transform_indices = @transform_3, window_bounds = array<i64: 8, 512>}, {transform_indices = @transform_4, window_bounds = array<i64: 8, 512>}]} {
    %c0 = arith.constant 0 : index
    %c0_0 = arith.constant 0 : index
    %0 = vector.load %arg3[%c0, %c0_0] : memref<8x512xf32, #tpu.memory_space<vmem>>, vector<8x512xf32>
    %c0_1 = arith.constant 0 : index
    %c0_2 = arith.constant 0 : index
    %1 = vector.load %arg4[%c0_1, %c0_2] : memref<8x512xf32, #tpu.memory_space<vmem>>, vector<8x512xf32>
    %c0_i32 = arith.constant 0 : i32
    %c8_i32 = arith.constant 8 : i32
    %2 = arith.muli %c0_i32, %c8_i32 : i32
    %3 = tpu.assume_multiple %2, 8 : i32
    %4 = arith.index_cast %3 : i32 to index
    %c0_3 = arith.constant 0 : index
    %5 = vector.load %arg1[%4, %c0_3] : memref<8x16xf32, #tpu.memory_space<vmem>>, vector<8x16xf32>
    %cst = arith.constant 0.000000e+00 : f32
    %6 = vector.broadcast %cst : f32 to vector<8x16xf32>
    %7 = arith.subf %5, %6 : vector<8x16xf32>
    %cst_4 = arith.constant 3.14159274 : f32
    %8 = vector.broadcast %cst_4 : f32 to vector<8x16xf32>
    %9 = arith.mulf %7, %8 : vector<8x16xf32>
    %c0_5 = arith.constant 0 : index
    %c0_6 = arith.constant 0 : index
    %10 = vector.load %arg2[%c0_5, %c0_6] : memref<16x512xf32, #tpu.memory_space<vmem>>, vector<16x512xf32>
    %cst_7 = arith.constant dense<0.000000e+00> : vector<8x512xf32>
    %11 = tpu.matmul %9, %10, %cst_7 {dimension_numbers = #tpu.dot_dimension_numbers<[1], [0], [0], [1], [0, 0, 1, 1], [], []>, precision = #tpu.contract_precision<fp32>} : vector<8x16xf32>, vector<16x512xf32>, vector<8x512xf32> -> vector<8x512xf32>
    %12 = vector.shape_cast %11 : vector<8x512xf32> to vector<1x8x512xf32>
    %13 = vector.shape_cast %0 : vector<8x512xf32> to vector<1x8x512xf32>
    %14 = arith.mulf %12, %13 : vector<1x8x512xf32>
    %15 = vector.shape_cast %1 : vector<8x512xf32> to vector<1x8x512xf32>
    %16 = arith.subf %14, %15 : vector<1x8x512xf32>
    %17 = math.cos %16 : vector<1x8x512xf32>
    %18 = vector.shape_cast %17 : vector<1x8x512xf32> to vector<8x512xf32>
    %19 = arith.index_cast %3 : i32 to index
    %c0_8 = arith.constant 0 : index
    %20 = vector.load %arg5[%19, %c0_8] : memref<8x512xf32, #tpu.memory_space<vmem>>, vector<8x512xf32>
    tpu.vector_store %arg5[%19, %c0_8], %18 {strides = array<i32>} : memref<8x512xf32, #tpu.memory_space<vmem>>, vector<8x512xf32>,
    %c1_i32 = arith.constant 1 : i32
    return
  }
  func.func @transform_0(%arg0: i32) -> (i32, i32) {
    %c0_i32 = arith.constant 0 : i32
    %c0_i32_0 = arith.constant 0 : i32
    return %arg0, %c0_i32 : i32, i32
  }
  func.func @transform_1(%arg0: i32) -> (i32, i32) {
    %c0_i32 = arith.constant 0 : i32
    %c0_i32_0 = arith.constant 0 : i32
    %c0_i32_1 = arith.constant 0 : i32
    return %c0_i32, %c0_i32_0 : i32, i32
  }
  func.func @transform_2(%arg0: i32) -> (i32, i32) {
    %c0_i32 = arith.constant 0 : i32
    %c0_i32_0 = arith.constant 0 : i32
    %c0_i32_1 = arith.constant 0 : i32
    return %c0_i32, %c0_i32_0 : i32, i32
  }
  func.func @transform_3(%arg0: i32) -> (i32, i32) {
    %c0_i32 = arith.constant 0 : i32
    %c0_i32_0 = arith.constant 0 : i32
    %c0_i32_1 = arith.constant 0 : i32
    return %c0_i32, %c0_i32_0 : i32, i32
  }
  func.func @transform_4(%arg0: i32) -> (i32, i32) {
    %c0_i32 = arith.constant 0 : i32
    %c0_i32_0 = arith.constant 0 : i32
    return %arg0, %c0_i32 : i32, i32
  }
}

</mosaic_0001>

<bundles_post_ra>
// kernel: tpu_custom_call.1
= control target key start
LH: loop header
LB: loop body
LE: loop exit
PB: predicated region body
PF: predicated region fallthrough
CT: control target
= control target key end

     0   :  { %9 = vsyncpa [#allocation3], 0  ;;  %s2106_s0 = inlined_call_operand.hbm [shape: f32[8,16], index: 0, kind: input, shape index: {}]   ;;  %s2107_s1 = inlined_call_operand.hbm [shape: f32[16,512], index: 1, kind: input, shape index: {}]   ;;  %s2108_s2 = inlined_call_operand.hbm [shape: f32[8,512], index: 2, kind: input, shape index: {}]   ;;  %s2109_s3 = inlined_call_operand.hbm [shape: f32[8,512], index: 3, kind: input, shape index: {}]   ;;  %s2110_s4 = inlined_call_operand.hbm [shape: f32[8,512], index: 4, kind: output, shape index: {}]  }
   0x1   :  { %10 = vsyncpa [#allocation6], 0 }
   0x2   :  { %11 = vsyncpa [#allocation9], 0  ;;  %s28_s17 = sshll.u32 %s2107_s1, 4  ;;  %s29_s17 = int_to_ptr.hbm [resolvable:$true] %s28_s17 }
   0x3   :  { %12 = vsyncpa [#allocation4], 0  ;;  %s1537_s18 = smov [#allocation5]   ;;  %s18_s22 = sshll.u32 %s2106_s0, 4  ;;  %s19_s22 = int_to_ptr.hbm [resolvable:$true] %s18_s22 }
   0x4   :  { %s30_s19 = sshll.u32 %s1537_s18, 4  ;;  %s1538_s23 = smov 512   ;;  %s31_s19 = int_to_ptr.vmem [resolvable:$true] %s30_s19 }
   0x5   :  { %s1539_s24 = smov 32   ;;  %s1540_s25 = smov [#allocation2]  }
   0x6   :  { %36 = dma.hbm_to_vmem [thread:$0]  %s29_s17, 1024, %s31_s19, [#allocation6], %s1538_s23, %s1538_s23, %s1539_s24  }
   0x7   :  { %s20_s26 = sshll.u32 %s1540_s25, 4  ;;  %s42_s29 = sshll.u32 %s2108_s2, 4  ;;  %s21_s26 = int_to_ptr.vmem [resolvable:$true] %s20_s26  ;;  %s43_s29 = int_to_ptr.hbm [resolvable:$true] %s42_s29 }
   0x8   :  { %23 = dma.hbm_to_vmem [thread:$0]  %s19_s22, 128, %s21_s26, [#allocation3]  }
   0x9   :  { %s53_s5 = sshll.u32 %s2109_s3, 4  ;;  %s1541_s6 = smov [#allocation7]   ;;  %s54_s5 = int_to_ptr.hbm [resolvable:$true] %s53_s5 }
   0xa   :  { %s44_s7 = sshll.u32 %s1541_s6, 4  ;;  %s1542_s0 = smov [#allocation8]   ;;  %s45_s7 = int_to_ptr.vmem [resolvable:$true] %s44_s7 }
   0xb   :  { %47 = dma.hbm_to_vmem [thread:$0]  %s43_s29, 512, %s45_s7, [#allocation6]  }
   0xc   :  { %s55_s8 = sshll.u32 %s1542_s0, 4  ;;  %s56_s8 = int_to_ptr.vmem [resolvable:$true] %s55_s8 }
   0xd   :  { %58 = dma.hbm_to_vmem [thread:$0]  %s54_s5, 512, %s56_s8, [#allocation9]  }
   0xe   :  { %1529 = dma.done.wait [#allocation3], 128  }
   0xf   :  { %1530 = vsyncadd [#allocation3], 4294967168 }
  0x10   :  { %1531 = dma.done.wait [#allocation6], 1536  }
  0x11   :  { %1532 = vsyncadd [#allocation6], 4294965760 }
  0x12   :  { %1533 = dma.done.wait [#allocation9], 512  }
  0x13   :  { %1534 = vsyncadd [#allocation9], 4294966784  ;;  %v89_v0 = vld [vmem:[#allocation5 + $0x20] sm:$0xff]  ;;  %v83_v2 = vld [vmem:[#allocation2] sm:$0xff]  ;;  %vm93_vm0 = vcmask 130048   ;;  %s1550_s2 = smov [#allocation10]  }
  0x14   :  { %v85_v1 = vld [vmem:[#allocation5] sm:$0xff]  ;;  %v111_v3 = vand.u32 4294901760, %v89_v0  ;;  %v84_v5 = vmul.f32 3.1415927, %v83_v2  ;;  %v90_v6 = vld [vmem:[#allocation5 + $0x28] sm:$0xff]  ;;  %v91_v10 = vld [vmem:[#allocation5 + $0x30] sm:$0xff] }
  0x15   :  { %v1588_v4 = vand.u32 4294901760, %v85_v1  ;;  %v86_v7 = vld [vmem:[#allocation5 + $0x8] sm:$0xff]  ;;  %v1590_v8 = vand.u32 4294901760, %v90_v6  ;;  %v1595_v14 = vand.u32 4294901760, %v91_v10  ;;  %v87_v15 = vld [vmem:[#allocation5 + $0x10] sm:$0xff]  ;;  %v92_v19 = vld [vmem:[#allocation5 + $0x38] sm:$0xff] }
  0x16   :  { %v1592_v9 = vand.u32 4294901760, %v86_v7  ;;  %v139_v11 = vsub.f32 %v89_v0, %v111_v3  ;;  %196 = vmatpush.msra.mxu3 %v111_v3  ;;  %v95_v13 = vsel %vm93_vm0, %v84_v5, 0  ;;  %112 = vmatpush.msra.mxu0 %v111_v3  ;;  %v1606_v25 = vand.u32 4294901760, %v87_v15  ;;  %v88_v33 = vld [vmem:[#allocation5 + $0x18] sm:$0xff]  ;;  %v75_v2 = vld [vmem:[#allocation7] sm:$0xff]  ;;  %s1369_s3 = sshll.u32 %s1550_s2, 4  ;;  %s1370_s3 = int_to_ptr.vmem [resolvable:$true] %s1369_s3 }
  0x17   :  { %v145_v12 = vsub.f32 %v85_v1, %v1588_v4  ;;  %v1597_v16 = vand.u32 4294901760, %v95_v13  ;;  %v298_v17 = vsub.f32 %v90_v6, %v1590_v8  ;;  %v1609_v28 = vsub.f32 %v91_v10, %v1595_v14  ;;  %v79_v5 = vld [vmem:[#allocation8] sm:$0xff]  ;;  %s1371_s11 = sshll.u32 %s2110_s4, 4  ;;  %s1372_s11 = int_to_ptr.hbm [resolvable:$true] %s1371_s11 }
  0x18   :  { %v304_v18 = vsub.f32 %v86_v7, %v1592_v9  ;;  %171 = vmatpush.msra.mxu2 %v139_v11  ;;  %v140_v20 = vand.u32 4294901760, %v139_v11  ;;  %198 = vmatpush.msra.mxu3 %v1588_v4  ;;  %v1611_v29 = vand.u32 4294901760, %v92_v19  ;;  %v463_v38 = vsub.f32 %v87_v15, %v1606_v25 }
  0x19   :  { %v146_v21 = vand.u32 4294901760, %v145_v12  ;;  %v1603_v22 = vsub.f32 %v95_v13, %v1597_v16  ;;  %114 = vmatpush.msra.mxu0 %v1588_v4  ;;  %v299_v23 = vand.u32 4294901760, %v298_v17  ;;  %v458_v40 = vand.u32 4294901760, %v1609_v28 }
  0x1a   :  { %v305_v24 = vand.u32 4294901760, %v304_v18  ;;  %174 = vmatpush.msra.mxu2 %v145_v12  ;;  %v141_v26 = vsub.f32 %v139_v11, %v140_v20  ;;  %v616_v41 = vsub.f32 %v92_v19, %v1611_v29  ;;  %v1625_v42 = vand.u32 4294901760, %v88_v33 }
  0x1b   :  { %v147_v27 = vsub.f32 %v145_v12, %v146_v21  ;;  %223 = vmatpush.msrb.mxu0 %v140_v20  ;;  %177 = vmatmul.f32.vlgmr.msra.gmra.mxu2 %v1603_v22  ;;  %v1615_v30 = vand.u32 4294901760, %v1603_v22  ;;  %v300_v31 = vsub.f32 %v298_v17, %v299_v23  ;;  %v464_v45 = vand.u32 4294901760, %v463_v38 }
  0x1c   :  { %v306_v32 = vsub.f32 %v304_v18, %v305_v24  ;;  %v142_v34 = vand.u32 4294901760, %v141_v26  ;;  %271 = vmatpush.msrb.mxu2 %v1590_v8  ;;  %v622_v44 = vsub.f32 %v88_v33, %v1625_v42  ;;  %v459_v46 = vsub.f32 %v1609_v28, %v458_v40 }
  0x1d   :  { %v148_v35 = vand.u32 4294901760, %v147_v27  ;;  %227 = vmatpush.msrb.mxu0 %v146_v21  ;;  %202 = vmatmul.f32.vlgmr.msra.gmra.mxu3 %v1615_v30  ;;  %v118_v36 = vsub.f32 %v1603_v22, %v1615_v30  ;;  %v301_v37 = vand.u32 4294901760, %v300_v31  ;;  %v617_v47 = vand.u32 4294901760, %v616_v41 }
  0x1e   :  { %143 = vmatpush.msra.mxu1 %v142_v34  ;;  %273 = vmatpush.msrb.mxu2 %v1592_v9  ;;  %v307_v39 = vand.u32 4294901760, %v306_v32  ;;  %v623_v48 = vand.u32 4294901760, %v622_v44  ;;  %v465_v49 = vsub.f32 %v463_v38, %v464_v45  ;;  %v460_v50 = vand.u32 4294901760, %v459_v46 }
  0x1f   :  { %v119_v43 = vand.u32 4294901760, %v118_v36  ;;  %302 = vmatpush.msrb.mxu3 %v301_v37  ;;  %v618_v51 = vsub.f32 %v616_v41, %v617_v47  ;;  %v1543_v33 = vmov 683565275  }
  0x20   :  { %382 = vmatpush.msra.mxu2 %v299_v23  ;;  %149 = vmatpush.msra.mxu1 %v148_v35  ;;  %v624_v52 = vsub.f32 %v622_v44, %v623_v48  ;;  %v466_v53 = vand.u32 4294901760, %v465_v49  ;;  %v76_v23 = vld [vmem:[#allocation7 + $0x8] sm:$0xff]  ;;  %v1544_v35 = vmov 2475754826  }
  0x21   :  { %120 = vmatmul.f32.vlgmr.msra.gmra.mxu0 %v119_v43  ;;  %151 = vmatmul.f32.vlgmr.msra.gmra.mxu1 %v1597_v16  ;;  %v619_v54 = vand.u32 4294901760, %v618_v51 }
  0x22   :  { %248 = vmatpush.msrb.mxu1 %v111_v3  ;;  %308 = vmatpush.msrb.mxu3 %v307_v39  ;;  %v625_v55 = vand.u32 4294901760, %v624_v52  ;;  %v1545_v39 = vmov 2131351028  }
  0x23   :  { %279 = vmatmul.f32.vlgmr.msrb.gmra.mxu2 %v119_v43  ;;  %330 = vmatpush.msra.mxu0 %v298_v17 }
  0x24   :  { %250 = vmatpush.msrb.mxu1 %v1588_v4  ;;  %407 = vmatpush.msra.mxu3 %v1590_v8 }
  0x25   :  { %310 = vmatmul.f32.vlgmr.msrb.gmra.mxu3 %v1597_v16  ;;  %386 = vmatpush.msra.mxu2 %v305_v24 }
  0x26   :  { %355 = vmatpush.msra.mxu1 %v1590_v8  ;;  %333 = vmatpush.msra.mxu0 %v304_v18 }
  0x27   :  { %409 = vmatpush.msra.mxu3 %v1592_v9  ;;  %489 = vmatpush.msrb.mxu2 %v1609_v28 }
  0x28   :  { %357 = vmatpush.msra.mxu1 %v1592_v9 }
  0x29   :  { %514 = vmatpush.msrb.mxu3 %v1595_v14  ;;  %229 = vmatmul.f32.vlgmr.msrb.gmra.mxu0 %v1597_v16 }
  0x2a   :  { %252 = vmatmul.f32.vlgmr.msrb.gmra.mxu1 %v1597_v16  ;;  %430 = vmatpush.msrb.mxu0 %v1595_v14 }
  0x2b   :  { %461 = vmatpush.msrb.mxu1 %v460_v50  ;;  %388 = vmatmul.f32.vlgmr.msra.gmra.mxu2 %v1597_v16 }
  0x2c   :  { %516 = vmatpush.msrb.mxu3 %v1606_v25  ;;  %492 = vmatpush.msrb.mxu2 %v463_v38 }
  0x2d   :  { %432 = vmatpush.msrb.mxu0 %v1606_v25  ;;  %411 = vmatmul.f32.vlgmr.msra.gmra.mxu3 %v1597_v16 }
  0x2e   :  { %467 = vmatpush.msrb.mxu1 %v466_v53  ;;  %589 = vmatpush.msra.mxu2 %v1611_v29 }
  0x2f   :  { %620 = vmatpush.msra.mxu3 %v619_v54 }
  0x30   :  { %591 = vmatpush.msra.mxu2 %v1625_v42 }
  0x31   :  { %626 = vmatpush.msra.mxu3 %v625_v55  ;;  %336 = vmatmul.f32.vlgmr.msra.gmra.mxu0 %v1603_v22 }
  0x32   :  { %361 = vmatmul.f32.vlgmr.msra.gmra.mxu1 %v1615_v30  ;;  %541 = vmatpush.msra.mxu0 %v458_v40 }
  0x33   :  { %566 = vmatpush.msra.mxu1 %v1595_v14  ;;  %495 = vmatmul.f32.vlgmr.msrb.gmra.mxu2 %v1603_v22 }
  0x34   :  { %545 = vmatpush.msra.mxu0 %v464_v45  ;;  %700 = vmatpush.msrb.mxu2 %v617_v47  ;;  %v1547_v45 = vmov 920167782  }
  0x35   :  { %568 = vmatpush.msra.mxu1 %v1606_v25  ;;  %520 = vmatmul.f32.vlgmr.msrb.gmra.mxu3 %v1615_v30 }
  0x36   :  { %725 = vmatpush.msrb.mxu3 %v1611_v29  ;;  %704 = vmatpush.msrb.mxu2 %v623_v48  ;;  %v1548_v48 = vmov 1326507024  }
  0x38   :  { %727 = vmatpush.msrb.mxu3 %v1625_v42 }
  0x39   :  { %438 = vmatmul.f32.vlgmr.msrb.gmra.mxu0 %v119_v43 }
  0x3a   :  { %469 = vmatmul.f32.vlgmr.msrb.gmra.mxu1 %v1597_v16  ;;  %648 = vmatpush.msrb.mxu0 %v616_v41 }
  0x3b   :  { %673 = vmatpush.msrb.mxu1 %v1611_v29  ;;  %597 = vmatmul.f32.vlgmr.msra.gmra.mxu2 %v119_v43  ;;  %v80_v29 = vld [vmem:[#allocation8 + $0x8] sm:$0xff] }
  0x3c   :  { %651 = vmatpush.msrb.mxu0 %v622_v44 }
  0x3d   :  { %675 = vmatpush.msrb.mxu1 %v1625_v42  ;;  %628 = vmatmul.f32.vlgmr.msra.gmra.mxu3 %v1597_v16  ;;  %v1546_v42 = vmov 2102212464  }
  0x41   :  { %547 = vmatmul.f32.vlgmr.msra.gmra.mxu0 %v1597_v16 }
  0x42   :  { %570 = vmatmul.f32.vlgmr.msra.gmra.mxu1 %v1597_v16 }
  0x43   :  { %706 = vmatmul.f32.vlgmr.msrb.gmra.mxu2 %v1597_v16 }
  0x45   :  { %729 = vmatmul.f32.vlgmr.msrb.gmra.mxu3 %v1597_v16 }
  0x49   :  { %654 = vmatmul.f32.vlgmr.msrb.gmra.mxu0 %v1603_v22 }
  0x4a   :  { %679 = vmatmul.f32.vlgmr.msrb.gmra.mxu1 %v1615_v30 }
  0x9e   :  { %v121_v56 = vpop.f32.mrf.mxu0  ;;  %v152_v57 = vpop.f32.mrf.mxu1 }
  0x9f   :  { %v153_v58 = vadd.f32 %v152_v57, %v121_v56  ;;  %v178_v59 = vpop.f32.mrf.mxu2 }
  0xa0   :  { %v203_v60 = vpop.f32.mrf.mxu3 }
  0xa1   :  { %v179_v61 = vadd.f32 %v178_v59, %v153_v58 }
  0xa3   :  { %v204_v62 = vadd.f32 %v203_v60, %v179_v61 }
  0xa6   :  { %v230_v63 = vpop.f32.mrf.mxu0 }
  0xa7   :  { %v253_v0 = vpop.f32.mrf.mxu1  ;;  %v231_v1 = vadd.f32 %v230_v63, %v204_v62  ;;  %v280_v3 = vpop.f32.mrf.mxu2 }
  0xa8   :  { %v311_v6 = vpop.f32.mrf.mxu3 }
  0xa9   :  { %v254_v4 = vadd.f32 %v253_v0, %v231_v1  ;;  %v312_v9 = vadd.f32 %v311_v6, %v280_v3 }
  0xab   :  { %v733_v7 = vmul.f32 %v254_v4, %v75_v2 }
  0xad   :  { %v1665_v8 = vsub.f32 %v733_v7, %v79_v5 }
  0xae   :  { %v337_v10 = vpop.f32.mrf.mxu0 }
  0xaf   :  { %v741_v11 = vand.u32 2147483647, %v1665_v8  ;;  %v744_v12 = vand.u32 2139095040, %v1665_v8  ;;  %v338_v13 = vadd.f32 %v337_v10, %v312_v9  ;;  %v362_v14 = vpop.f32.mrf.mxu1  ;;  %v389_v17 = vpop.f32.mrf.mxu2 }
  0xb0   :  { %v412_v21 = vpop.f32.mrf.mxu3 }
  0xb1   :  { %v745_v15 = vshrl.u32 %v744_v12, 23  ;;  %v363_v16 = vadd.f32 %v362_v14, %v338_v13  ;;  %v748_v19 = vand.u32 8388607, %v741_v11 }
  0xb3   :  { %v1383_v18 = vadd.s32 4294967169, %v745_v15  ;;  %v390_v20 = vadd.f32 %v389_v17, %v363_v16  ;;  %v749_v25 = vor.u32 8388608, %v748_v19 }
  0xb5   :  { %v751_v22 = vadd.s32 1, %v1383_v18  ;;  %v413_v24 = vadd.f32 %v412_v21, %v390_v20  ;;  %v1671_v31 = vshll.u32 %v749_v25, 8 }
  0xb6   :  { %v439_v9 = vpop.f32.mrf.mxu0 }
  0xb7   :  { %vm752_vm1 = vcmp.gt.s32.totalorder %v751_v22, 0  ;;  %v734_v27 = vmul.f32 %v413_v24, %v76_v23  ;;  %v790_v60 = vand.u32 65535, %v1671_v31  ;;  %v791_v2 = vshrl.u32 %v1671_v31, 16  ;;  %v470_v10 = vpop.f32.mrf.mxu1 }
  0xb8   :  { %v753_v26 = vsel %vm752_vm1, %v751_v22, 0  ;;  %v471_v20 = vadd.f32 %v470_v10, %v439_v9 }
  0xb9   :  { %v755_v28 = vand.u32 31, %v753_v26  ;;  %v1673_v32 = vshrl.u32 %v753_v26, 5  ;;  %v1677_v37 = vsub.f32 %v734_v27, %v80_v29 }
  0xbb   :  { %v756_v30 = vsub.s32 32, %v755_v28  ;;  %v758_v34 = vshll.u32 %v1543_v33, %v755_v28  ;;  %v761_v36 = vshll.u32 %v1544_v35, %v755_v28  ;;  %v764_v41 = vshll.u32 %v1545_v39, %v755_v28 }
  0xbc   :  { %v767_v44 = vshll.u32 %v1546_v42, %v755_v28  ;;  %v770_v47 = vshll.u32 %v1547_v45, %v755_v28  ;;  %vm773_vm2 = vcmp.lt.s32.totalorder %v1673_v32, 1  ;;  %v898_v55 = vand.u32 2139095040, %v1677_v37 }
  0xbd   :  { %v759_v38 = vshrl.u32 %v1544_v35, %v756_v30  ;;  %v762_v40 = vshrl.u32 %v1545_v39, %v756_v30  ;;  %v765_v43 = vshrl.u32 %v1546_v42, %v756_v30  ;;  %v768_v46 = vshrl.u32 %v1547_v45, %v756_v30 }
  0xbe   :  { %v771_v49 = vshrl.u32 %v1548_v48, %v756_v30  ;;  %vm776_vm3 = vcmp.lt.s32.totalorder %v1673_v32, 4  ;;  %vm775_vm4 = vcmp.lt.s32.totalorder %v1673_v32, 3  ;;  %vm774_vm5 = vcmp.lt.s32.totalorder %v1673_v32, 2 }
  0xbf   :  { %v760_v50 = vor.u32 %v759_v38, %v758_v34  ;;  %v763_v51 = vor.u32 %v762_v40, %v761_v36  ;;  %v766_v52 = vor.u32 %v765_v43, %v764_v41  ;;  %v769_v53 = vor.u32 %v768_v46, %v767_v44  ;;  %v496_v36 = vpop.f32.mrf.mxu2 }
  0xc0   :  { %v772_v54 = vor.u32 %v771_v49, %v770_v47  ;;  %v899_v63 = vshrl.u32 %v898_v55, 23  ;;  %v895_v3 = vand.u32 2147483647, %v1677_v37  ;;  %v757_v12 = vshrl.u32 %v1543_v33, %v756_v30 }
  0xc1   :  { %v781_v56 = vsel %vm773_vm2, %v760_v50, %v763_v51  ;;  %v785_v57 = vsel %vm773_vm2, %v763_v51, %v766_v52  ;;  %v782_v58 = vsel %vm776_vm3, %v769_v53, 920167782  ;;  %v778_v13 = vsel %vm776_vm3, %v766_v52, 2102212464 }
  0xc2   :  { %v786_v59 = vsel %vm776_vm3, %v772_v54, 1326507024  ;;  %v783_v61 = vsel %vm775_vm4, %v766_v52, %v782_v58  ;;  %v1386_v16 = vadd.s32 4294967169, %v899_v63  ;;  %v777_v17 = vsel %vm773_vm2, %v757_v12, %v760_v50 }
  0xc3   :  { %v787_v62 = vsel %vm775_vm4, %v769_v53, %v786_v59  ;;  %v784_v0 = vsel %vm774_vm5, %v781_v56, %v783_v61  ;;  %v779_v21 = vsel %vm775_vm4, %v763_v51, %v778_v13  ;;  %v1720_v24 = vand.u32 8388607, %v895_v3 }
  0xc4   :  { %v788_v1 = vsel %vm774_vm5, %v785_v57, %v787_v62  ;;  %v814_v6 = vand.u32 65535, %v784_v0  ;;  %v815_v7 = vshrl.u32 %v784_v0, 16  ;;  %v905_v34 = vadd.s32 1, %v1386_v16 }
  0xc5   :  { %v792_v4 = vand.u32 65535, %v788_v1  ;;  %v793_v5 = vshrl.u32 %v788_v1, 16  ;;  %v1549_v38 = vmov 0   ;;  %v497_v50 = vadd.f32 %v496_v36, %v471_v20 }
  0xc6   :  { %v817_v18 = vmul.u32 %v815_v7, %v790_v60  ;;  %v818_v19 = vmul.u32 %v814_v6, %v791_v2  ;;  %v816_v26 = vmul.u32 %v814_v6, %v790_v60  ;;  %v819_v27 = vmul.u32 %v815_v7, %v791_v2  ;;  %v521_v7 = vpop.f32.mrf.mxu3 }
  0xc7   :  { %v795_v14 = vmul.u32 %v793_v5, %v790_v60  ;;  %v796_v15 = vmul.u32 %v792_v4, %v791_v2  ;;  %v794_v22 = vmul.u32 %v792_v4, %v790_v60  ;;  %v797_v25 = vmul.u32 %v793_v5, %v791_v2 }
  0xc8   :  { %v820_v28 = vshll.u32 %v817_v18, 16  ;;  %v822_v41 = vshll.u32 %v818_v19, 16  ;;  %vm906_vm9 = vcmp.gt.s32.totalorder %v905_v34, 0  ;;  %v780_v55 = vsel %vm774_vm5, %v777_v17, %v779_v21  ;;  %v548_v21 = vpop.f32.mrf.mxu0 }
  0xc9   :  { %v798_v23 = vshll.u32 %v795_v14, 16  ;;  %v800_v29 = vshll.u32 %v796_v15, 16  ;;  %v799_v51 = vshrl.u32 %v795_v14, 16  ;;  %v907_v54 = vsel %vm906_vm9, %v905_v34, 0 }
  0xca   :  { %vm824_vm7 = vc.u32 %v816_v26, %v820_v28  ;;  %v826_v43 = vadd.s32 %v820_v28, %v816_v26  ;;  %v821_v56 = vshrl.u32 %v817_v18, 16  ;;  %v909_v58 = vand.u32 31, %v907_v54 }
  0xcb   :  { %vm802_vm6 = vc.u32 %v794_v22, %v798_v23  ;;  %v804_v30 = vadd.s32 %v798_v23, %v794_v22  ;;  %v825_v46 = vsel %vm824_vm7, 1, %v1549_v38  ;;  %v801_v59 = vshrl.u32 %v796_v15, 16 }
  0xcc   :  { %v803_v40 = vsel %vm802_vm6, 1, %v1549_v38  ;;  %v827_v49 = vadd.s32 %v825_v46, %v819_v27  ;;  %vm828_vm10 = vc.u32 %v826_v43, %v822_v41  ;;  %v823_v61 = vshrl.u32 %v818_v19, 16 }
  0xcd   :  { %v805_v44 = vadd.s32 %v803_v40, %v797_v25  ;;  %vm806_vm8 = vc.u32 %v804_v30, %v800_v29  ;;  %v829_v53 = vsel %vm828_vm10, 1, %v1549_v38  ;;  %v903_v62 = vor.u32 8388608, %v1720_v24 }
  0xce   :  { %v807_v47 = vsel %vm806_vm8, 1, %v1549_v38  ;;  %v831_v57 = vadd.s32 %v829_v53, %v827_v49  ;;  %v1729_v63 = vadd.s32 %v826_v43, %v822_v41  ;;  %v1731_v1 = vshrl.u32 %v907_v54, 5  ;;  %v571_v41 = vpop.f32.mrf.mxu1 }
  0xcf   :  { %v809_v52 = vadd.s32 %v807_v47, %v805_v44  ;;  %v1733_v2 = vsub.s32 32, %v909_v58  ;;  %v912_v5 = vshll.u32 %v1543_v33, %v909_v58  ;;  %v915_v32 = vshll.u32 %v1544_v35, %v909_v58 }
  0xd0   :  { %v832_v0 = vadd.s32 %v831_v57, %v821_v56  ;;  %v918_v6 = vshll.u32 %v1545_v39, %v909_v58  ;;  %v921_v13 = vshll.u32 %v1546_v42, %v909_v58  ;;  %v924_v16 = vshll.u32 %v1547_v45, %v909_v58  ;;  %v629_v56 = vpop.f32.mrf.mxu3 }
  0xd1   :  { %v810_v60 = vadd.s32 %v809_v52, %v799_v51  ;;  %v913_v10 = vshrl.u32 %v1544_v35, %v1733_v2  ;;  %v916_v12 = vshrl.u32 %v1545_v39, %v1733_v2  ;;  %v919_v14 = vshrl.u32 %v1546_v42, %v1733_v2 }
  0xd2   :  { %v833_v9 = vadd.s32 %v832_v0, %v823_v61  ;;  %v922_v15 = vshrl.u32 %v1547_v45, %v1733_v2  ;;  %v925_v20 = vshrl.u32 %v1548_v48, %v1733_v2  ;;  %v834_v22 = vmul.u32 %v1671_v31, %v780_v55  ;;  %v598_v55 = vpop.f32.mrf.mxu2 }
  0xd3   :  { %v811_v4 = vadd.s32 %v810_v60, %v801_v59  ;;  %v1749_v18 = vor.u32 %v913_v10, %v912_v5  ;;  %v1751_v19 = vor.u32 %v916_v12, %v915_v32  ;;  %v920_v23 = vor.u32 %v919_v14, %v918_v6  ;;  %v77_v60 = vld [vmem:[#allocation7 + $0x10] sm:$0xff] }
  0xd4   :  { %v837_v17 = vadd.s32 1, %v833_v9  ;;  %v923_v24 = vor.u32 %v922_v15, %v921_v13  ;;  %v522_v25 = vadd.f32 %v521_v7, %v497_v50  ;;  %v926_v27 = vor.u32 %v925_v20, %v924_v16  ;;  %v81_v16 = vld [vmem:[#allocation8 + $0x10] sm:$0xff] }
  0xd5   :  { %vm836_vm11 = vc.u32 %v811_v4, %v1729_v63  ;;  %vm927_vm12 = vcmp.lt.s32.totalorder %v1731_v1, 1  ;;  %v1757_v28 = vshll.u32 %v903_v62, 8  ;;  %vm930_vm13 = vcmp.lt.s32.totalorder %v1731_v1, 4 }
  0xd6   :  { %v838_v26 = vsel %vm836_vm11, %v837_v17, %v833_v9  ;;  %v935_v30 = vsel %vm927_vm12, %v1749_v18, %v1751_v19  ;;  %v549_v34 = vadd.f32 %v548_v21, %v522_v25  ;;  %vm929_vm14 = vcmp.lt.s32.totalorder %v1731_v1, 3 }
  0xd7   :  { %v839_v29 = vadd.s32 %v838_v26, %v834_v22  ;;  %v936_v31 = vsel %vm930_vm13, %v923_v24, 920167782  ;;  %v939_v36 = vsel %vm927_vm12, %v1751_v19, %v920_v23  ;;  %v940_v40 = vsel %vm930_vm13, %v926_v27, 1326507024 }
  0xd8   :  { %vm928_vm15 = vcmp.lt.s32.totalorder %v1731_v1, 2  ;;  %v937_v44 = vsel %vm929_vm14, %v920_v23, %v936_v31  ;;  %v941_v46 = vsel %vm929_vm14, %v923_v24, %v940_v40  ;;  %v944_v50 = vand.u32 65535, %v1757_v28 }
  0xd9   :  { %v840_v43 = vadd.s32 536870912, %v839_v29  ;;  %v938_v47 = vsel %vm928_vm15, %v935_v30, %v937_v44  ;;  %v942_v49 = vsel %vm928_vm15, %v939_v36, %v941_v46  ;;  %v572_v54 = vadd.f32 %v571_v41, %v549_v34 }
  0xda   :  { %v946_v52 = vand.u32 65535, %v942_v49  ;;  %v947_v53 = vshrl.u32 %v942_v49, 16  ;;  %v945_v57 = vshrl.u32 %v1757_v28, 16  ;;  %v968_v58 = vand.u32 65535, %v938_v47  ;;  %v655_v49 = vpop.f32.mrf.mxu0 }
  0xdb   :  { %v1782_v51 = vshrl.u32 %v840_v43, 30  ;;  %v969_v59 = vshrl.u32 %v938_v47, 16  ;;  %v630_v32 = vadd.f32 %v629_v56, %v598_v55  ;;  %v735_v10 = vmul.f32 %v572_v54, %v77_v60 }
  0xdc   :  { %v949_v62 = vmul.u32 %v947_v53, %v944_v50  ;;  %v950_v0 = vmul.u32 %v946_v52, %v945_v57  ;;  %v948_v7 = vmul.u32 %v946_v52, %v944_v50  ;;  %v835_v12 = vadd.s32 %v1729_v63, %v811_v4 }
  0xdd   :  { %v842_v61 = vshll.u32 %v1782_v51, 30  ;;  %v971_v5 = vmul.u32 %v969_v59, %v944_v50  ;;  %v911_v13 = vshrl.u32 %v1543_v33, %v1733_v2  ;;  %v951_v14 = vmul.u32 %v947_v53, %v945_v57 }
  0xde   :  { %v952_v9 = vshll.u32 %v949_v62, 16  ;;  %v970_v15 = vmul.u32 %v968_v58, %v944_v50  ;;  %v972_v20 = vmul.u32 %v968_v58, %v945_v57  ;;  %v954_v21 = vshll.u32 %v950_v0, 16 }
  0xdf   :  { %v1786_v6 = vsub.s32 %v839_v29, %v842_v61  ;;  %v974_v25 = vshll.u32 %v971_v5, 16  ;;  %v932_v63 = vsel %vm930_vm13, %v920_v23, 2102212464  ;;  %v1797_v4 = vsub.f32 %v735_v10, %v81_v16  ;;  %v680_v16 = vpop.f32.mrf.mxu1 }
  0xe0   :  { %vm956_vm1 = vc.u32 %v948_v7, %v952_v9  ;;  %v958_v24 = vadd.s32 %v952_v9, %v948_v7  ;;  %v973_v29 = vmul.u32 %v969_v59, %v945_v57  ;;  %v976_v34 = vshll.u32 %v972_v20, 16 }
  0xe1   :  { %vm844_vm0 = vcmp.lt.s32.totalorder %v1786_v6, 0  ;;  %v845_v17 = vsub.s32 0, %v1786_v6  ;;  %v957_v22 = vsel %vm956_vm1, 1, %v1549_v38  ;;  %vm978_vm3 = vc.u32 %v970_v15, %v974_v25 }
  0xe2   :  { %v959_v2 = vadd.s32 %v957_v22, %v951_v14  ;;  %vm960_vm2 = vc.u32 %v958_v24, %v954_v21  ;;  %v979_v31 = vsel %vm978_vm3, 1, %v1549_v38  ;;  %v980_v36 = vadd.s32 %v974_v25, %v970_v15 }
  0xe3   :  { %v846_v26 = vsel %vm844_vm0, %v845_v17, %v1786_v6  ;;  %v961_v30 = vsel %vm960_vm2, 1, %v1549_v38  ;;  %v953_v41 = vshrl.u32 %v949_v62, 16  ;;  %v981_v44 = vadd.s32 %v979_v31, %v973_v29 }
  0xe4   :  { %v847_v27 = vclz %v846_v26  ;;  %v963_v43 = vadd.s32 %v961_v30, %v959_v2  ;;  %v931_v23 = vsel %vm927_vm12, %v911_v13, %v1749_v18  ;;  %v933_v46 = vsel %vm929_vm14, %v1751_v19, %v932_v63  ;;  %v707_v26 = vpop.f32.mrf.mxu2 }
  0xe5   :  { %vm982_vm4 = vc.u32 %v980_v36, %v976_v34  ;;  %v1052_v47 = vand.u32 2139095040, %v1797_v4  ;;  %v955_v50 = vshrl.u32 %v950_v0, 16  ;;  %v975_v55 = vshrl.u32 %v971_v5, 16 }
  0xe6   :  { %v1384_v40 = vadd.s32 4294967294, %v847_v27  ;;  %v964_v52 = vadd.s32 %v963_v43, %v953_v41  ;;  %v983_v53 = vsel %vm982_vm4, 1, %v1549_v38  ;;  %v656_v60 = vadd.f32 %v655_v49, %v630_v32 }
  0xe7   :  { %v985_v56 = vadd.s32 %v983_v53, %v981_v44  ;;  %v1053_v57 = vshrl.u32 %v1052_v47, 23  ;;  %v977_v61 = vshrl.u32 %v972_v20, 16  ;;  %v1049_v62 = vand.u32 2147483647, %v1797_v4 }
  0xe8   :  { %vm1385_vm5 = vcmp.lt.s32.totalorder %v1384_v40, 0  ;;  %v1809_v18 = vadd.s32 %v964_v52, %v955_v50  ;;  %v1813_v13 = vadd.s32 %v980_v36, %v976_v34  ;;  %v934_v5 = vsel %vm928_vm15, %v931_v23, %v933_v46 }
  0xe9   :  { %v850_v54 = vsel %vm1385_vm5, 0, %v1384_v40  ;;  %v986_v19 = vadd.s32 %v985_v56, %v975_v55  ;;  %v1389_v7 = vadd.s32 4294967169, %v1053_v57  ;;  %v1056_v20 = vand.u32 8388607, %v1049_v62 }
  0xea   :  { %v851_v58 = vsub.s32 32, %v850_v54  ;;  %v855_v59 = vsub.s32 4294967266, %v850_v54  ;;  %v852_v9 = vshll.u32 %v1786_v6, %v850_v54  ;;  %vm990_vm6 = vc.u32 %v1809_v18, %v1813_v13 }
  0xeb   :  { %v987_v14 = vadd.s32 %v986_v19, %v977_v61  ;;  %v1059_v15 = vadd.s32 1, %v1389_v7  ;;  %v681_v24 = vadd.f32 %v680_v16, %v656_v60  ;;  %vm743_vm8 = vcmp.lt.s32.totalorder %v1665_v8, 0 }
  0xec   :  { %v853_v0 = vshrl.u32 %v835_v12, %v851_v58  ;;  %v856_v10 = vadd.s32 127, %v855_v59  ;;  %v988_v12 = vmul.u32 %v1757_v28, %v934_v5  ;;  %v1057_v29 = vor.u32 8388608, %v1056_v20  ;;  %v730_v59 = vpop.f32.mrf.mxu3 }
  0xed   :  { %v991_v32 = vadd.s32 1, %v987_v14  ;;  %vm1060_vm7 = vcmp.gt.s32.totalorder %v1059_v15, 0  ;;  %v708_v40 = vadd.f32 %v707_v26, %v681_v24  ;;  %vm1855_vm9 = vcmp.le.f32.partialorder %v741_v11, 0.7853982 }
  0xee   :  { %v854_v17 = vor.u32 %v853_v0, %v852_v9  ;;  %v857_v21 = vshll.u32 %v856_v10, 23  ;;  %v1061_v22 = vsel %vm1060_vm7, %v1059_v15, 0  ;;  %v1865_v10 = vshll.u32 %v1057_v29, 8 }
  0xef   :  { %v992_v1 = vsel %vm990_vm6, %v991_v32, %v987_v14  ;;  %v1063_v25 = vand.u32 31, %v1061_v22  ;;  %v1839_v50 = vshrl.u32 %v1061_v22, 5  ;;  %v731_v5 = vadd.f32 %v730_v59, %v708_v40 }
  0xf0   :  { %v858_v6 = vor.u32 4788187, %v857_v21  ;;  %v861_v2 = vcvt.s32.f32 %v854_v17  ;;  %v993_v27 = vadd.s32 %v992_v1, %v988_v12  ;;  %v78_v21 = vld [vmem:[#allocation7 + $0x18] sm:$0xff]  ;;  %v989_v40 = vadd.s32 %v1813_v13, %v1809_v18 }
  0xf1   :  { %v1823_v30 = vsub.s32 32, %v1063_v25  ;;  %v1066_v36 = vshll.u32 %v1543_v33, %v1063_v25  ;;  %v1069_v41 = vshll.u32 %v1544_v35, %v1063_v25  ;;  %v1072_v52 = vshll.u32 %v1545_v39, %v1063_v25 }
  0xf2   :  { %v859_v63 = vand.u32 2147483647, %v858_v6  ;;  %v994_v31 = vadd.s32 536870912, %v993_v27  ;;  %v1075_v53 = vshll.u32 %v1546_v42, %v1063_v25  ;;  %v1078_v54 = vshll.u32 %v1547_v45, %v1063_v25 }
  0xf3   :  { %v1067_v28 = vshrl.u32 %v1544_v35, %v1823_v30  ;;  %v1070_v43 = vshrl.u32 %v1545_v39, %v1823_v30  ;;  %v1073_v44 = vshrl.u32 %v1546_v42, %v1823_v30  ;;  %v1076_v47 = vshrl.u32 %v1547_v45, %v1823_v30 }
  0xf4   :  { %v862_v34 = vmul.f32 %v861_v2, %v859_v63  ;;  %v1833_v46 = vshrl.u32 %v994_v31, 30  ;;  %v1079_v49 = vshrl.u32 %v1548_v48, %v1823_v30  ;;  %vm1081_vm10 = vcmp.lt.s32.totalorder %v1839_v50, 1  ;;  %v82_v31 = vld [vmem:[#allocation8 + $0x18] sm:$0xff] }
  0xf5   :  { %v1847_v57 = vor.u32 %v1067_v28, %v1066_v36  ;;  %v1849_v58 = vor.u32 %v1070_v43, %v1069_v41  ;;  %v1851_v60 = vor.u32 %v1073_v44, %v1072_v52  ;;  %v1077_v61 = vor.u32 %v1076_v47, %v1075_v53 }
  0xf6   :  { %v863_v23 = vxor.u32 2147483648, %v862_v34  ;;  %v996_v56 = vshll.u32 %v1833_v46, 30  ;;  %v1080_v19 = vor.u32 %v1079_v49, %v1078_v54  ;;  %vm1084_vm12 = vcmp.lt.s32.totalorder %v1839_v50, 4 }
  0xf7   :  { %v1089_v11 = vsel %vm1081_vm10, %v1847_v57, %v1849_v58  ;;  %vm1083_vm13 = vcmp.lt.s32.totalorder %v1839_v50, 3  ;;  %v1090_v15 = vsel %vm1084_vm12, %v1077_v61, 920167782  ;;  %v1093_v16 = vsel %vm1081_vm10, %v1849_v58, %v1851_v60 }
  0xf8   :  { %v864_v55 = vsel %vm743_vm8, %v863_v23, %v862_v34  ;;  %v997_v9 = vsub.s32 %v993_v27, %v996_v56  ;;  %v1094_v17 = vsel %vm1084_vm12, %v1080_v19, 1326507024  ;;  %vm1082_vm14 = vcmp.lt.s32.totalorder %v1839_v50, 2 }
  0xf9   :  { %v1862_v0 = vsel %vm1855_vm9, %v1665_v8, %v864_v55  ;;  %v1091_v6 = vsel %vm1083_vm13, %v1851_v60, %v1090_v15  ;;  %v1095_v24 = vsel %vm1083_vm13, %v1077_v61, %v1094_v17  ;;  %v1098_v25 = vand.u32 65535, %v1865_v10 }
  0xfa   :  { %vm998_vm11 = vcmp.lt.s32.totalorder %v997_v9, 0  ;;  %v999_v14 = vsub.s32 0, %v997_v9  ;;  %v1883_v32 = vmul.f32 %v1862_v0, %v1862_v0  ;;  %v1092_v22 = vsel %vm1082_vm14, %v1089_v11, %v1091_v6 }
  0xfb   :  { %v1096_v1 = vsel %vm1082_vm14, %v1093_v16, %v1095_v24  ;;  %v1123_v26 = vshrl.u32 %v1092_v22, 16  ;;  %v736_v63 = vmul.f32 %v731_v5, %v78_v21  ;;  %v1099_v27 = vshrl.u32 %v1865_v10, 16 }
  0xfc   :  { %v1000_v20 = vsel %vm998_vm11, %v999_v14, %v997_v9  ;;  %v1100_v29 = vand.u32 65535, %v1096_v1  ;;  %v1101_v34 = vshrl.u32 %v1096_v1, 16  ;;  %v877_v36 = vmul.f32 -0.00019511016, %v1883_v32 }
  0xfd   :  { %v1001_v12 = vclz %v1000_v20  ;;  %v1122_v44 = vand.u32 65535, %v1092_v22  ;;  %v1125_v23 = vmul.u32 %v1123_v26, %v1098_v25  ;;  %v1900_v47 = vsub.f32 %v736_v63, %v82_v31 }
  0xfe   :  { %v1103_v28 = vmul.u32 %v1101_v34, %v1098_v25  ;;  %v1104_v41 = vmul.u32 %v1100_v29, %v1099_v27  ;;  %v1102_v53 = vmul.u32 %v1100_v29, %v1098_v25  ;;  %v878_v55 = vadd.f32 0.008332121, %v877_v36 }
  0xff   :  { %v1387_v2 = vadd.s32 4294967294, %v1001_v12  ;;  %v1105_v59 = vmul.u32 %v1101_v34, %v1099_v27  ;;  %v1124_v14 = vmul.u32 %v1122_v44, %v1098_v25  ;;  %v1126_v11 = vmul.u32 %v1122_v44, %v1099_v27 }
 0x100   :  { %v1106_v54 = vshll.u32 %v1103_v28, 16  ;;  %v1108_v61 = vshll.u32 %v1104_v41, 16  ;;  %v1128_v15 = vshll.u32 %v1125_v23, 16  ;;  %v879_v20 = vmul.f32 %v878_v55, %v1883_v32 }
 0x101   :  { %vm1388_vm15 = vcmp.lt.s32.totalorder %v1387_v2, 0  ;;  %v1127_v12 = vmul.u32 %v1123_v26, %v1099_v27  ;;  %v1107_v24 = vshrl.u32 %v1103_v28, 16  ;;  %v1130_v63 = vshll.u32 %v1126_v11, 16 }
 0x102   :  { %v1004_v43 = vsel %vm1388_vm15, 0, %v1387_v2  ;;  %vm1110_vm0 = vc.u32 %v1102_v53, %v1106_v54  ;;  %v1112_v18 = vadd.s32 %v1106_v54, %v1102_v53  ;;  %vm1132_vm2 = vc.u32 %v1124_v14, %v1128_v15 }
 0x103   :  { %v1005_v49 = vsub.s32 32, %v1004_v43  ;;  %v1009_v52 = vsub.s32 4294967266, %v1004_v43  ;;  %v1006_v56 = vshll.u32 %v997_v9, %v1004_v43  ;;  %v1111_v13 = vsel %vm1110_vm0, 1, %v1549_v38 }
 0x104   :  { %v1113_v21 = vadd.s32 %v1111_v13, %v1105_v59  ;;  %vm1114_vm1 = vc.u32 %v1112_v18, %v1108_v61  ;;  %v1086_v9 = vsel %vm1084_vm12, %v1851_v60, 2102212464  ;;  %v1133_v2 = vsel %vm1132_vm2, 1, %v1549_v38 }
 0x105   :  { %v1007_v19 = vshrl.u32 %v989_v40, %v1005_v49  ;;  %v1010_v5 = vadd.s32 127, %v1009_v52  ;;  %v1115_v6 = vsel %vm1114_vm1, 1, %v1549_v38  ;;  %v1134_v29 = vadd.s32 %v1128_v15, %v1124_v14 }
 0x106   :  { %v1117_v1 = vadd.s32 %v1115_v6, %v1113_v21  ;;  %v1135_v36 = vadd.s32 %v1133_v2, %v1127_v12  ;;  %v1206_v40 = vand.u32 2139095040, %v1900_v47  ;;  %v865_v43 = vsub.s32 4, %v1782_v51 }
 0x107   :  { %v1008_v16 = vor.u32 %v1007_v19, %v1006_v56  ;;  %v1011_v17 = vshll.u32 %v1010_v5, 23  ;;  %v880_v60 = vadd.f32 -0.16666654, %v879_v20  ;;  %v1065_v26 = vshrl.u32 %v1543_v33, %v1823_v30 }
 0x108   :  { %v1118_v31 = vadd.s32 %v1117_v1, %v1107_v24  ;;  %vm1136_vm3 = vc.u32 %v1134_v29, %v1130_v63  ;;  %v1109_v28 = vshrl.u32 %v1104_v41, 16  ;;  %v1207_v49 = vshrl.u32 %v1206_v40, 23 }
 0x109   :  { %v1012_v22 = vor.u32 4788187, %v1011_v17  ;;  %v1015_v25 = vcvt.s32.f32 %v1008_v16  ;;  %v1137_v44 = vsel %vm1136_vm3, 1, %v1549_v38  ;;  %v1085_v52 = vsel %vm1081_vm10, %v1065_v26, %v1847_v57 }
 0x10a   :  { %v1087_v53 = vsel %vm1083_vm13, %v1849_v58, %v1086_v9  ;;  %v1129_v54 = vshrl.u32 %v1125_v23, 16  ;;  %v1139_v55 = vadd.s32 %v1137_v44, %v1135_v36  ;;  %v1920_v59 = vadd.s32 %v1118_v31, %v1109_v28 }
 0x10b   :  { %v1013_v34 = vand.u32 2147483647, %v1012_v22  ;;  %v1203_v30 = vand.u32 2147483647, %v1900_v47  ;;  %v1392_v61 = vadd.s32 4294967169, %v1207_v49  ;;  %v881_v41 = vmul.f32 %v880_v60, %v1883_v32 }
 0x10c   :  { %vm897_vm4 = vcmp.lt.s32.totalorder %v1677_v37, 0  ;;  %v1131_v19 = vshrl.u32 %v1126_v11, 16  ;;  %v1140_v5 = vadd.s32 %v1139_v55, %v1129_v54  ;;  %vm1927_vm5 = vcmp.le.f32.partialorder %v895_v3, 0.7853982 }
 0x10d   :  { %v1016_v27 = vmul.f32 %v1015_v25, %v1013_v34  ;;  %v1933_v23 = vadd.s32 %v1134_v29, %v1130_v63  ;;  %v1213_v18 = vadd.s32 1, %v1392_v61  ;;  %v866_v13 = vsel %vm743_vm8, %v865_v43, %v1782_v51 }
 0x10e   :  { %v1088_v3 = vsel %vm1082_vm14, %v1085_v52, %v1087_v53  ;;  %v1141_v11 = vadd.s32 %v1140_v5, %v1131_v19  ;;  %v1210_v16 = vand.u32 8388607, %v1203_v30  ;;  %v882_v51 = vadd.f32 1.0, %v881_v41 }
 0x10f   :  { %v1017_v56 = vxor.u32 2147483648, %v1016_v27  ;;  %vm1144_vm6 = vc.u32 %v1920_v59, %v1933_v23  ;;  %vm1214_vm7 = vcmp.gt.s32.totalorder %v1213_v18, 0  ;;  %v1019_v17 = vsub.s32 4, %v1833_v46 }
 0x110   :  { %v1145_v21 = vadd.s32 1, %v1141_v11  ;;  %v1215_v20 = vsel %vm1214_vm7, %v1213_v18, 0  ;;  %v1142_v9 = vmul.u32 %v1865_v10, %v1088_v3  ;;  %v868_v12 = vsel %vm1855_vm9, 0, %v866_v13 }
 0x111   :  { %v1018_v58 = vsel %vm897_vm4, %v1017_v56, %v1016_v27  ;;  %v1217_v6 = vand.u32 31, %v1215_v20  ;;  %v1211_v25 = vor.u32 8388608, %v1210_v16  ;;  %v1959_v2 = vmul.f32 %v882_v51, %v1862_v0 }
 0x112   :  { %v1941_v14 = vsel %vm1927_vm5, %v1677_v37, %v1018_v58  ;;  %v1146_v22 = vsel %vm1144_vm6, %v1145_v21, %v1141_v11  ;;  %v1964_v29 = vsel %vm897_vm4, %v1019_v17, %v1833_v46  ;;  %v1977_v27 = vshrl.u32 %v1215_v20, 5 }
 0x113   :  { %v1947_v15 = vmul.f32 %v1941_v14, %v1941_v14  ;;  %v1147_v1 = vadd.s32 %v1146_v22, %v1142_v9  ;;  %v1218_v63 = vsub.s32 32, %v1217_v6  ;;  %v1220_v34 = vshll.u32 %v1543_v33, %v1217_v6 }
 0x114   :  { %v1223_v10 = vshll.u32 %v1544_v35, %v1217_v6  ;;  %v1229_v40 = vshll.u32 %v1546_v42, %v1217_v6  ;;  %v1226_v28 = vshll.u32 %v1545_v39, %v1217_v6  ;;  %v1980_v44 = vshll.u32 %v1211_v25, 8 }
 0x115   :  { %v1031_v50 = vmul.f32 -0.00019511016, %v1947_v15  ;;  %v1148_v31 = vadd.s32 536870912, %v1147_v1  ;;  %v1221_v36 = vshrl.u32 %v1544_v35, %v1218_v63  ;;  %v1224_v43 = vshrl.u32 %v1545_v39, %v1218_v63 }
 0x116   :  { %v1227_v0 = vshrl.u32 %v1546_v42, %v1218_v63  ;;  %v1230_v60 = vshrl.u32 %v1547_v45, %v1218_v63  ;;  %v1233_v46 = vshrl.u32 %v1548_v48, %v1218_v63  ;;  %v1232_v53 = vshll.u32 %v1547_v45, %v1217_v6 }
 0x117   :  { %v1032_v24 = vadd.f32 0.008332121, %v1031_v50  ;;  %v1975_v26 = vshrl.u32 %v1148_v31, 30  ;;  %v1222_v49 = vor.u32 %v1221_v36, %v1220_v34  ;;  %v1982_v35 = vor.u32 %v1224_v43, %v1223_v10 }
 0x118   :  { %v1231_v52 = vor.u32 %v1230_v60, %v1229_v40  ;;  %v1228_v54 = vor.u32 %v1227_v0, %v1226_v28  ;;  %v1986_v55 = vand.u32 3, %v868_v12  ;;  %v1022_v48 = vsel %vm1927_vm5, 0, %v1964_v29 }
 0x119   :  { %v1033_v7 = vmul.f32 %v1032_v24, %v1947_v15  ;;  %v1150_v42 = vshll.u32 %v1975_v26, 30  ;;  %v1234_v61 = vor.u32 %v1233_v46, %v1232_v53  ;;  %v888_v39 = vxor.u32 2147483648, %v1959_v2 }
 0x11a   :  { %vm1235_vm8 = vcmp.lt.s32.totalorder %v1977_v27, 1  ;;  %vm1238_vm9 = vcmp.lt.s32.totalorder %v1977_v27, 4  ;;  %v1219_v45 = vshrl.u32 %v1543_v33, %v1218_v63  ;;  %v1252_v58 = vand.u32 65535, %v1980_v44 }
 0x11b   :  { %v1034_v56 = vadd.f32 -0.16666654, %v1033_v7  ;;  %v1151_v41 = vsub.s32 %v1147_v1, %v1150_v42  ;;  %v1243_v19 = vsel %vm1235_vm8, %v1222_v49, %v1982_v35  ;;  %v1244_v5 = vsel %vm1238_vm9, %v1231_v52, 920167782 }
 0x11c   :  { %vm1237_vm11 = vcmp.lt.s32.totalorder %v1977_v27, 3  ;;  %v1247_v13 = vsel %vm1235_vm8, %v1982_v35, %v1228_v54  ;;  %vm1236_vm12 = vcmp.lt.s32.totalorder %v1977_v27, 2  ;;  %v1248_v11 = vsel %vm1238_vm9, %v1234_v61, 1326507024 }
 0x11d   :  { %vm1152_vm10 = vcmp.lt.s32.totalorder %v1151_v41, 0  ;;  %v1153_v18 = vsub.s32 0, %v1151_v41  ;;  %v1035_v3 = vmul.f32 %v1034_v56, %v1947_v15  ;;  %v1245_v33 = vsel %vm1237_vm11, %v1228_v54, %v1244_v5 }
 0x11e   :  { %v1246_v51 = vsel %vm1236_vm12, %v1243_v19, %v1245_v33  ;;  %v1249_v17 = vsel %vm1237_vm11, %v1231_v52, %v1248_v11  ;;  %v870_v21 = vmul.f32 -0.001358992, %v1883_v32  ;;  %v1143_v12 = vadd.s32 %v1933_v23, %v1920_v59 }
 0x11f   :  { %v1154_v16 = vsel %vm1152_vm10, %v1153_v18, %v1151_v41  ;;  %v1250_v50 = vsel %vm1236_vm12, %v1247_v13, %v1249_v17  ;;  %v1276_v9 = vand.u32 65535, %v1246_v51  ;;  %v1277_v6 = vshrl.u32 %v1246_v51, 16 }
 0x120   :  { %v1155_v20 = vclz %v1154_v16  ;;  %v1253_v22 = vshrl.u32 %v1980_v44, 16  ;;  %v1254_v24 = vand.u32 65535, %v1250_v50  ;;  %v1255_v1 = vshrl.u32 %v1250_v50, 16 }
 0x121   :  { %v1036_v25 = vadd.f32 1.0, %v1035_v3  ;;  %v2023_v34 = vsel %vm1235_vm8, %v1219_v45, %v1222_v49  ;;  %v1279_v10 = vmul.u32 %v1277_v6, %v1252_v58  ;;  %v1240_v7 = vsel %vm1238_vm9, %v1228_v54, 2102212464 }
 0x122   :  { %v1390_v63 = vadd.s32 4294967294, %v1155_v20  ;;  %v1257_v31 = vmul.u32 %v1255_v1, %v1252_v58  ;;  %v1258_v36 = vmul.u32 %v1254_v24, %v1253_v22  ;;  %v1280_v40 = vmul.u32 %v1276_v9, %v1253_v22 }
 0x123   :  { %v1278_v43 = vmul.u32 %v1276_v9, %v1252_v58  ;;  %v1282_v59 = vshll.u32 %v1279_v10, 16  ;;  %v871_v23 = vadd.f32 0.041655596, %v870_v21  ;;  %v1256_v60 = vmul.u32 %v1254_v24, %v1252_v58 }
 0x124   :  { %vm1391_vm13 = vcmp.lt.s32.totalorder %v1390_v63, 0  ;;  %v1259_v46 = vmul.u32 %v1255_v1, %v1253_v22  ;;  %v1260_v28 = vshll.u32 %v1257_v31, 16  ;;  %v1262_v42 = vshll.u32 %v1258_v36, 16 }
 0x125   :  { %v1158_v0 = vsel %vm1391_vm13, 0, %v1390_v63  ;;  %v1281_v49 = vmul.u32 %v1277_v6, %v1253_v22  ;;  %v1284_v45 = vshll.u32 %v1280_v40, 16  ;;  %vm1286_vm15 = vc.u32 %v1278_v43, %v1282_v59 }
 0x126   :  { %v1159_v52 = vsub.s32 32, %v1158_v0  ;;  %v1163_v53 = vsub.s32 4294967266, %v1158_v0  ;;  %v1160_v56 = vshll.u32 %v1151_v41, %v1158_v0  ;;  %vm1264_vm14 = vc.u32 %v1256_v60, %v1260_v28 }
 0x127   :  { %v1266_v61 = vadd.s32 %v1260_v28, %v1256_v60  ;;  %v1265_v5 = vsel %vm1264_vm14, 1, %v1549_v38  ;;  %v1287_v13 = vsel %vm1286_vm15, 1, %v1549_v38  ;;  %v1288_v58 = vadd.s32 %v1282_v59, %v1278_v43 }
 0x128   :  { %v1161_v54 = vshrl.u32 %v1143_v12, %v1159_v52  ;;  %v1164_v19 = vadd.s32 127, %v1163_v53  ;;  %v1267_v18 = vadd.s32 %v1265_v5, %v1259_v46  ;;  %v1289_v16 = vadd.s32 %v1287_v13, %v1281_v49 }
 0x129   :  { %vm1268_vm0 = vc.u32 %v1266_v61, %v1262_v42  ;;  %vm1051_vm1 = vcmp.lt.s32.totalorder %v1797_v4, 0  ;;  %v1261_v41 = vshrl.u32 %v1257_v31, 16  ;;  %vm1290_vm2 = vc.u32 %v1288_v58, %v1284_v45 }
 0x12a   :  { %v1162_v3 = vor.u32 %v1161_v54, %v1160_v56  ;;  %v1165_v33 = vshll.u32 %v1164_v19, 23  ;;  %v1269_v11 = vsel %vm1268_vm0, 1, %v1549_v38  ;;  %v872_v17 = vmul.f32 %v871_v23, %v1883_v32 }
 0x12b   :  { %v1271_v51 = vadd.s32 %v1269_v11, %v1267_v18  ;;  %vm2034_vm3 = vcmp.le.f32.partialorder %v1049_v62, 0.7853982  ;;  %v1283_v50 = vshrl.u32 %v1279_v10, 16  ;;  %v1291_v9 = vsel %vm1290_vm2, 1, %v1549_v38 }
 0x12c   :  { %v1166_v20 = vor.u32 4788187, %v1165_v33  ;;  %v1024_v6 = vmul.f32 -0.001358992, %v1947_v15  ;;  %v1263_v12 = vshrl.u32 %v1258_v36, 16  ;;  %v1293_v24 = vadd.s32 %v1291_v9, %v1289_v16 }
 0x12d   :  { %v1272_v22 = vadd.s32 %v1271_v51, %v1261_v41  ;;  %v873_v1 = vadd.f32 -0.4999988, %v872_v17  ;;  %v1169_v31 = vcvt.s32.f32 %v1162_v3  ;;  %v1241_v43 = vsel %vm1237_vm11, %v1982_v35, %v1240_v7 }
 0x12e   :  { %v1167_v63 = vand.u32 2147483647, %v1166_v20  ;;  %vm884_vm4 = vweird.f32 %v1665_v8  ;;  %v1025_v62 = vadd.f32 0.041655596, %v1024_v6  ;;  %v1285_v10 = vshrl.u32 %v1280_v40, 16 }
 0x12f   :  { %v2044_v59 = vadd.s32 %v1272_v22, %v1263_v12  ;;  %v1294_v23 = vadd.s32 %v1293_v24, %v1283_v50  ;;  %v874_v38 = vmul.f32 %v873_v1, %v1883_v32  ;;  %v1037_v36 = vmul.f32 %v1036_v25, %v1941_v14 }
 0x130   :  { %v1170_v0 = vmul.f32 %v1169_v31, %v1167_v63  ;;  %v2048_v60 = vadd.s32 %v1288_v58, %v1284_v45  ;;  %v1026_v46 = vmul.f32 %v1025_v62, %v1947_v15  ;;  %v1039_v35 = vand.u32 3, %v1022_v48 }
 0x131   :  { %v1242_v7 = vsel %vm1236_vm12, %v2023_v34, %v1241_v43  ;;  %v1295_v40 = vadd.s32 %v1294_v23, %v1285_v10  ;;  %v875_v28 = vadd.f32 1.0, %v874_v38  ;;  %vm887_vm7 = vcmp.eq.s32.totalorder %v1986_v55, 0 }
 0x132   :  { %v1171_v52 = vxor.u32 2147483648, %v1170_v0  ;;  %vm1298_vm6 = vc.u32 %v2044_v59, %v2048_v60  ;;  %v1027_v32 = vadd.f32 -0.4999988, %v1026_v46  ;;  %vm890_vm5 = vcmp.eq.s32.totalorder %v1986_v55, 2 }
 0x133   :  { %v1299_v14 = vadd.s32 1, %v1295_v40  ;;  %v889_v57 = vsel %vm887_vm7, %v875_v28, %v888_v39  ;;  %v891_v29 = vxor.u32 2147483648, %v875_v28  ;;  %v1042_v48 = vxor.u32 2147483648, %v1037_v36 }
 0x134   :  { %v1172_v27 = vsel %vm1051_vm1, %v1171_v52, %v1170_v0  ;;  %v1296_v25 = vmul.u32 %v1980_v44, %v1242_v7  ;;  %v1028_v34 = vmul.f32 %v1027_v32, %v1947_v15  ;;  %vm886_vm8 = vcmp.lt.s32.totalorder %v1986_v55, 2 }
 0x135   :  { %v1175_v53 = vsel %vm2034_vm3, %v1797_v4, %v1172_v27  ;;  %v1300_v42 = vsel %vm1298_vm6, %v1299_v14, %v1295_v40  ;;  %v892_v39 = vsel %vm890_vm5, %v891_v29, %v1959_v2  ;;  %vm1041_vm9 = vcmp.eq.s32.totalorder %v1039_v35, 0 }
 0x136   :  { %v1177_v49 = vmul.f32 %v1175_v53, %v1175_v53  ;;  %v1301_v56 = vadd.s32 %v1300_v42, %v1296_v25  ;;  %v893_v61 = vsel %vm886_vm8, %v889_v57, %v892_v39  ;;  %v1029_v45 = vadd.f32 1.0, %v1028_v34 }
 0x137   :  { %v894_v54 = vsel %vm884_vm4, nan, %v893_v61  ;;  %v1173_v18 = vsub.s32 4, %v1975_v26  ;;  %vm1044_vm10 = vcmp.eq.s32.totalorder %v1039_v35, 2  ;;  %vm1040_vm11 = vcmp.lt.s32.totalorder %v1039_v35, 2 }
 0x138   :  { %v1185_v44 = vmul.f32 -0.00019511016, %v1177_v49  ;;  %v1302_v19 = vadd.s32 536870912, %v1301_v56  ;;  %v1043_v15 = vsel %vm1041_vm9, %v1029_v45, %v1042_v48  ;;  %v1045_v5 = vxor.u32 2147483648, %v1029_v45  ;;  %1360 = vst [vmem:[#allocation10] sm:$0xff] %v894_v54 }
 0x139   :  { %v1178_v13 = vmul.f32 -0.001358992, %v1177_v49  ;;  %vm1038_vm12 = vweird.f32 %v1677_v37  ;;  %v1174_v41 = vsel %vm1051_vm1, %v1173_v18, %v1975_v26  ;;  %vm1192_vm15 = vweird.f32 %v1797_v4 }
 0x13a   :  { %v1186_v55 = vadd.f32 0.008332121, %v1185_v44  ;;  %v2076_v58 = vshrl.u32 %v1302_v19, 30  ;;  %v1046_v2 = vsel %vm1044_vm10, %v1045_v5, %v1037_v36  ;;  %v1176_v9 = vsel %vm2034_vm3, 0, %v1174_v41 }
 0x13b   :  { %v1047_v3 = vsel %vm1040_vm11, %v1043_v15, %v1046_v2  ;;  %v1179_v8 = vadd.f32 0.041655596, %v1178_v13  ;;  %v1193_v1 = vand.u32 3, %v1176_v9  ;;  %v1297_v36 = vadd.s32 %v2048_v60, %v2044_v59 }
 0x13c   :  { %v1187_v33 = vmul.f32 %v1186_v55, %v1177_v49  ;;  %v1304_v11 = vshll.u32 %v2076_v58, 30  ;;  %v1048_v16 = vsel %vm1038_vm12, nan, %v1047_v3  ;;  %vm1205_vm3 = vcmp.lt.s32.totalorder %v1900_v47, 0 }
 0x13d   :  { %v1180_v51 = vmul.f32 %v1179_v8, %v1177_v49  ;;  %1361 = vst [vmem:[#allocation10 + $0x8] sm:$0xff] %v1048_v16  ;;  %vm1195_vm0 = vcmp.eq.s32.totalorder %v1193_v1, 0  ;;  %vm1198_vm1 = vcmp.eq.s32.totalorder %v1193_v1, 2  ;;  %vm1194_vm2 = vcmp.lt.s32.totalorder %v1193_v1, 2 }
 0x13e   :  { %v1188_v17 = vadd.f32 -0.16666654, %v1187_v33  ;;  %v1305_v20 = vsub.s32 %v1301_v56, %v1304_v11  ;;  %vm2091_vm4 = vcmp.le.f32.partialorder %v1203_v30, 0.7853982  ;;  %v1327_v39 = vsub.s32 4, %v2076_v58 }
 0x13f   :  { %v1181_v50 = vadd.f32 -0.4999988, %v1180_v51  ;;  %vm1346_vm8 = vweird.f32 %v1900_v47 }
 0x140   :  { %v1189_v6 = vmul.f32 %v1188_v17, %v1177_v49  ;;  %vm1306_vm13 = vcmp.lt.s32.totalorder %v1305_v20, 0  ;;  %v1307_v37 = vsub.s32 0, %v1305_v20  ;;  %v1328_v54 = vsel %vm1205_vm3, %v1327_v39, %v2076_v58 }
 0x141   :  { %v1182_v12 = vmul.f32 %v1181_v50, %v1177_v49  ;;  %v1330_v19 = vsel %vm2091_vm4, 0, %v1328_v54 }
 0x142   :  { %v1190_v22 = vadd.f32 1.0, %v1189_v6  ;;  %v1308_v24 = vsel %vm1306_vm13, %v1307_v37, %v1305_v20  ;;  %v1347_v55 = vand.u32 3, %v1330_v19 }
 0x143   :  { %v1309_v63 = vclz %v1308_v24  ;;  %v1183_v31 = vadd.f32 1.0, %v1182_v12 }
 0x144   :  { %v1191_v43 = vmul.f32 %v1190_v22, %v1175_v53  ;;  %vm1349_vm6 = vcmp.eq.s32.totalorder %v1347_v55, 0  ;;  %vm1352_vm7 = vcmp.eq.s32.totalorder %v1347_v55, 2  ;;  %vm1348_vm5 = vcmp.lt.s32.totalorder %v1347_v55, 2 }
 0x145   :  { %v1393_v62 = vadd.s32 4294967294, %v1309_v63  ;;  %v1199_v26 = vxor.u32 2147483648, %v1183_v31 }
 0x146   :  { %v1196_v10 = vxor.u32 2147483648, %v1191_v43 }
 0x147   :  { %vm1394_vm14 = vcmp.lt.s32.totalorder %v1393_v62, 0  ;;  %v1200_v38 = vsel %vm1198_vm1, %v1199_v26, %v1191_v43 }
 0x148   :  { %v1312_v21 = vsel %vm1394_vm14, 0, %v1393_v62  ;;  %v1197_v23 = vsel %vm1195_vm0, %v1183_v31, %v1196_v10 }
 0x149   :  { %v1313_v0 = vsub.s32 32, %v1312_v21  ;;  %v1317_v46 = vsub.s32 4294967266, %v1312_v21  ;;  %v1201_v35 = vsel %vm1194_vm2, %v1197_v23, %v1200_v38  ;;  %v1314_v40 = vshll.u32 %v1305_v20, %v1312_v21 }
 0x14a   :  { %v1202_v7 = vsel %vm1192_vm15, nan, %v1201_v35 }
 0x14b   :  { %v1315_v28 = vshrl.u32 %v1297_v36, %v1313_v0  ;;  %v1318_v52 = vadd.s32 127, %v1317_v46  ;;  %1362 = vst [vmem:[#allocation10 + $0x10] sm:$0xff] %v1202_v7 }
 0x14d   :  { %v1316_v32 = vor.u32 %v1315_v28, %v1314_v40  ;;  %v1319_v14 = vshll.u32 %v1318_v52, 23 }
 0x14f   :  { %v1320_v4 = vor.u32 4788187, %v1319_v14  ;;  %v1323_v29 = vcvt.s32.f32 %v1316_v32 }
 0x151   :  { %v1321_v57 = vand.u32 2147483647, %v1320_v4 }
 0x153   :  { %v1324_v48 = vmul.f32 %v1323_v29, %v1321_v57 }
 0x155   :  { %v1325_v27 = vxor.u32 2147483648, %v1324_v48 }
 0x157   :  { %v1326_v60 = vsel %vm1205_vm3, %v1325_v27, %v1324_v48 }
 0x158   :  { %v1329_v25 = vsel %vm2091_vm4, %v1900_v47, %v1326_v60 }
 0x159   :  { %v1331_v34 = vmul.f32 %v1329_v25, %v1329_v25 }
 0x15b   :  { %v1339_v53 = vmul.f32 -0.00019511016, %v1331_v34  ;;  %v1332_v42 = vmul.f32 -0.001358992, %v1331_v34 }
 0x15d   :  { %v1340_v49 = vadd.f32 0.008332121, %v1339_v53  ;;  %v1333_v56 = vadd.f32 0.041655596, %v1332_v42 }
 0x15f   :  { %v1341_v61 = vmul.f32 %v1340_v49, %v1331_v34  ;;  %v1334_v45 = vmul.f32 %v1333_v56, %v1331_v34 }
 0x161   :  { %v1342_v30 = vadd.f32 -0.16666654, %v1341_v61  ;;  %v1335_v44 = vadd.f32 -0.4999988, %v1334_v45 }
 0x163   :  { %v1343_v15 = vmul.f32 %v1342_v30, %v1331_v34  ;;  %v1336_v5 = vmul.f32 %v1335_v44, %v1331_v34 }
 0x165   :  { %v1344_v18 = vadd.f32 1.0, %v1343_v15  ;;  %v1337_v13 = vadd.f32 1.0, %v1336_v5 }
 0x167   :  { %v1345_v2 = vmul.f32 %v1344_v18, %v1329_v25  ;;  %v1353_v3 = vxor.u32 2147483648, %v1337_v13 }
 0x169   :  { %v1350_v8 = vxor.u32 2147483648, %v1345_v2  ;;  %v1354_v33 = vsel %vm1352_vm7, %v1353_v3, %v1345_v2 }
 0x16b   :  { %v1351_v58 = vsel %vm1349_vm6, %v1337_v13, %v1350_v8 }
 0x16c   :  { %v1355_v11 = vsel %vm1348_vm5, %v1351_v58, %v1354_v33 }
 0x16d   :  { %v1356_v16 = vsel %vm1346_vm8, nan, %v1355_v11 }
 0x16e   :  { %1363 = vst [vmem:[#allocation10 + $0x18] sm:$0xff] %v1356_v16 }
 0x16f   :  { %1374 = dma.vmem_to_hbm [thread:$0]  %s1370_s3, 512, %s1372_s11, [#allocation4]  }
 0x170   :  { %1535 = dma.done.wait [#allocation4], 512  }
 0x171   :  { %1536 = vsyncadd [#allocation4], 4294966784 }
 0x172   :  { %1379 = vsyncpa [#allocation3], 1 }
 0x173   :  { %1380 = vsyncpa [#allocation6], 1 }
 0x174   :  { %1381 = vsyncpa [#allocation9], 1 }
 0x175   :  { %1382 = vsyncpa [#allocation4], 1 }

</bundles_post_ra>
